<compile_context>
chip_gen: v7x
topology: tpu7x:2x2x1
jax: 0.10.0
libtpu: 0.0.40
codegen_flags: <defaults>
</compile_context>

<pallas_src>
import jax
import jax.numpy as jnp
from jax import lax
from jax.experimental import pallas as pl
from jax.experimental.pallas import tpu as pltpu


def _round_up(v, m):
    return (v + m - 1) // m * m


def _conv_stats_kernel(p_ref, w_ref, y_ref, sum_ref, ssq_ref):
    """One M-tile of the im2col matmul + per-tile BatchNorm partial stats.

    p_ref:   (tm, K_pad)        bf16  im2col patch rows (zero-padded rows/cols)
    w_ref:   (K_pad, Cout_pad)  bf16  folded (KH*KW*Cin, Cout) weight matrix
    y_ref:   (tm, Cout_pad)     f32   conv output rows
    sum_ref/ssq_ref: (1, 1, Cout_pad) f32 per-tile partial sum / sum-of-squares
    """
    acc = jnp.dot(p_ref[...], w_ref[...],
                  preferred_element_type=jnp.float32)            # single MXU dot
    y_ref[...] = acc.astype(y_ref.dtype)
    # Zero-padded patch rows / weight columns produce exactly 0 here, so no
    # masking is needed for the statistics.
    sum_ref[0] = jnp.sum(acc, axis=0, keepdims=True)
    ssq_ref[0] = jnp.sum(acc * acc, axis=0, keepdims=True)


def _pick_m_tile(m_true, k_pad, cout_pad, *, target_steps=4,
                 vmem_budget=24 * 1024 * 1024):
    """Largest M tile that keeps >= target_steps grid steps and fits the v7x
    VMEM budget (double-buffered LHS bf16 + out f32 + resident weights)."""
    tm = 128
    while True:
        nxt = tm * 2
        steps = pl.cdiv(m_true, nxt)
        working_set = (2 * (nxt * k_pad * 2 + nxt * cout_pad * 4)
                       + k_pad * cout_pad * 2)
        if steps < target_steps or working_set > vmem_budget or nxt > 2048:
            return tm
        tm = nxt


def cnn_bn_forward(x, weight, gamma, beta, *, eps=1e-5, bn=True):
    """x: (N, Cin, H, W), weight: (Cout, Cin, KH, KW) -> (N, Cout, OH, OW) f32.

    Conv2d(stride=1, padding=0, dilation=1, bias=False) followed (optionally) by
    BatchNorm2d using training-mode batch statistics (biased variance), matching
    the PyTorch CNNBN module's forward pass.
    """
    n, cin, h, w = x.shape
    cout, _, kh, kw = weight.shape
    oh, ow = h - kh + 1, w - kw + 1

    k_true = kh * kw * cin
    k_pad = _round_up(k_true, 8)
    cout_pad = _round_up(cout, 128)      # lane-dense outputs (use 256 if Cout>=256)
    m_true = n * oh * ow

    tm = _pick_m_tile(m_true, k_pad, cout_pad)
    m_pad = _round_up(m_true, tm)
    grid_m = m_pad // tm

    # --- host-side (XLA) im2col: lane-dense LHS with K = KH*KW*Cin -------------
    xh = jnp.transpose(x, (0, 2, 3, 1)).astype(jnp.bfloat16)     # (N, H, W, Cin)
    patches = [xh[:, i:i + oh, j:j + ow, :]
               for i in range(kh) for j in range(kw)]            # each (N,OH,OW,Cin)
    p = jnp.concatenate(patches, axis=-1).reshape(m_true, k_true)
    p = jnp.pad(p, ((0, m_pad - m_true), (0, k_pad - k_true)))   # bf16, zero pad

    # (Cout, Cin, KH, KW) -> (KH, KW, Cin, Cout) -> (K, Cout), matching patch order.
    w_mat = jnp.transpose(weight, (2, 3, 1, 0)).reshape(k_true, cout)
    w_mat = jnp.pad(w_mat, ((0, k_pad - k_true), (0, cout_pad - cout)))
    w_mat = w_mat.astype(jnp.bfloat16)

    flops = 2 * m_pad * k_pad * cout_pad
    bytes_accessed = (p.size * 2 + w_mat.size * 2
                      + m_pad * cout_pad * 4 + 2 * grid_m * cout_pad * 4)

    y_flat, psum, pssq = pl.pallas_call(
        _conv_stats_kernel,
        out_shape=(
            jax.ShapeDtypeStruct((m_pad, cout_pad), jnp.float32),
            jax.ShapeDtypeStruct((grid_m, 1, cout_pad), jnp.float32),
            jax.ShapeDtypeStruct((grid_m, 1, cout_pad), jnp.float32),
        ),
        grid=(grid_m,),
        in_specs=[
            pl.BlockSpec((tm, k_pad), lambda i: (i, 0)),
            pl.BlockSpec((k_pad, cout_pad), lambda i: (0, 0)),   # grid-invariant
        ],
        out_specs=(
            pl.BlockSpec((tm, cout_pad), lambda i: (i, 0)),
            pl.BlockSpec((1, 1, cout_pad), lambda i: (i, 0, 0)),
            pl.BlockSpec((1, 1, cout_pad), lambda i: (i, 0, 0)),
        ),
        compiler_params=pltpu.CompilerParams(
            dimension_semantics=("parallel",)),
        cost_estimate=pl.CostEstimate(
            flops=flops, transcendentals=0, bytes_accessed=bytes_accessed),
    )(p, w_mat)

    # --- XLA epilogue: crop padded rows/channels, fuse BN affine + transpose ---
    y4 = y_flat[:m_true].reshape(n, oh, ow, cout_pad)[..., :cout]   # (N,OH,OW,Cout)

    if bn:
        total_sum = jnp.sum(psum[:, 0, :cout], axis=0)              # (Cout,)
        total_ssq = jnp.sum(pssq[:, 0, :cout], axis=0)
        mean = total_sum / m_true
        # Biased variance (PyTorch BN normalization). Note: E[x^2]-E[x]^2 form;
        # fine here, a two-pass/Welford reduction would be safer in production.
        var = jnp.maximum(total_ssq / m_true - mean * mean, 0.0)
        scale = gamma.astype(jnp.float32) * lax.rsqrt(var + eps)
        shift = beta.astype(jnp.float32) - mean * scale
        y4 = y4 * scale.reshape(1, 1, 1, cout) + shift.reshape(1, 1, 1, cout)

    return jnp.transpose(y4, (0, 3, 1, 2))                          # NCHW


def _reference(x, weight, gamma, beta, eps=1e-5, bn=True):
    y = lax.conv_general_dilated(
        x.astype(jnp.float32), weight.astype(jnp.float32),
        window_strides=(1, 1), padding="VALID",
        dimension_numbers=("NCHW", "OIHW", "NCHW"))
    if bn:
        mean = jnp.mean(y, axis=(0, 2, 3), keepdims=True)
        var = jnp.mean((y - mean) ** 2, axis=(0, 2, 3), keepdims=True)
        y = (y - mean) * lax.rsqrt(var + eps)
        y = y * gamma.reshape(1, -1, 1, 1) + beta.reshape(1, -1, 1, 1)
    return y


if __name__ == "__main__":
    key = jax.random.PRNGKey(0)
    k_x, k_w, k_g, k_b = jax.random.split(key, 4)

    N, Cin, H, W = 2, 4, 16, 16
    Cout, KH, KW = 8, 3, 3

    x = jax.random.normal(k_x, (N, Cin, H, W), dtype=jnp.float32)
    weight = 0.1 * jax.random.normal(k_w, (Cout, Cin, KH, KW), dtype=jnp.float32)
    # BatchNorm affine params (perturbed from the PyTorch defaults so the affine
    # path is actually exercised).
    gamma = 1.0 + 0.1 * jax.random.normal(k_g, (Cout,), dtype=jnp.float32)
    beta = 0.1 * jax.random.normal(k_b, (Cout,), dtype=jnp.float32)

    out = cnn_bn_forward(x, weight, gamma, beta, bn=True)
    out = jax.block_until_ready(out)
    assert out.shape == (N, Cout, H - KH + 1, W - KW + 1)

    ref = _reference(x, weight, gamma, beta, bn=True)
    # bf16 MXU operands + f32 accumulation -> compare with bf16-appropriate tolerance.
    assert jnp.allclose(out, ref, atol=5e-2, rtol=5e-2), "mismatch vs reference (bn=True)"

    out_nobn = jax.block_until_ready(cnn_bn_forward(x, weight, gamma, beta, bn=False))
    ref_nobn = _reference(x, weight, gamma, beta, bn=False)
    assert jnp.allclose(out_nobn, ref_nobn, atol=2e-2, rtol=5e-2), "mismatch vs reference (bn=False)"

    print("KERNEL_OK")
</pallas_src>

<mosaic_0001>
module attributes {stable_mosaic.version = 11 : i64} {
  func.func @_conv_stats_kernel(%arg0: i32, %arg1: memref<128x40xbf16, #tpu.memory_space<vmem>>, %arg2: memref<40x128xbf16, #tpu.memory_space<vmem>>, %arg3: memref<128x128xf32, #tpu.memory_space<vmem>>, %arg4: memref<1x1x128xf32, #tpu.memory_space<vmem>>, %arg5: memref<1x1x128xf32, #tpu.memory_space<vmem>>) attributes {dimension_semantics = [#tpu.dimension_semantics<parallel>], iteration_bounds = array<i64: 4>, scalar_prefetch = 0 : i64, scratch_operands = 0 : i64, tpu.core_type = #tpu.core_type<tc>, window_params = [{transform_indices = @transform_0, window_bounds = array<i64: 128, 40>}, {pipeline_mode = #tpu.pipeline_mode<synchronous>, transform_indices = @transform_1, window_bounds = array<i64: 40, 128>}, {transform_indices = @transform_2, window_bounds = array<i64: 128, 128>}, {transform_indices = @transform_3, window_bounds = array<i64: 1, 1, 128>}, {transform_indices = @transform_4, window_bounds = array<i64: 1, 1, 128>}]} {
    %c0 = arith.constant 0 : index
    %c0_0 = arith.constant 0 : index
    %0 = vector.load %arg1[%c0, %c0_0] : memref<128x40xbf16, #tpu.memory_space<vmem>>, vector<128x40xbf16>
    %c0_1 = arith.constant 0 : index
    %c0_2 = arith.constant 0 : index
    %1 = vector.load %arg2[%c0_1, %c0_2] : memref<40x128xbf16, #tpu.memory_space<vmem>>, vector<40x128xbf16>
    %cst = arith.constant dense<0.000000e+00> : vector<128x128xf32>
    %2 = tpu.matmul %0, %1, %cst {dimension_numbers = #tpu.dot_dimension_numbers<[1], [0], [0], [1], [0, 0, 1, 1], [], []>} : vector<128x40xbf16>, vector<40x128xbf16>, vector<128x128xf32> -> vector<128x128xf32>
    %c0_3 = arith.constant 0 : index
    %c0_4 = arith.constant 0 : index
    %3 = vector.load %arg3[%c0_3, %c0_4] : memref<128x128xf32, #tpu.memory_space<vmem>>, vector<128x128xf32>
    tpu.vector_store %arg3[%c0_3, %c0_4], %2 {strides = array<i32>} : memref<128x128xf32, #tpu.memory_space<vmem>>, vector<128x128xf32>,
    %cst_5 = arith.constant dense<0.000000e+00> : vector<128xf32>
    %4 = vector.multi_reduction <add>, %2, %cst_5 [0] : vector<128x128xf32> to vector<128xf32>
    %5 = vector.shape_cast %4 : vector<128xf32> to vector<1x128xf32>
    %c0_6 = arith.constant 0 : index
    %c0_7 = arith.constant 0 : index
    %c0_8 = arith.constant 0 : index
    %6 = vector.load %arg4[%c0_6, %c0_7, %c0_8] : memref<1x1x128xf32, #tpu.memory_space<vmem>>, vector<1x1x128xf32>
    %7 = vector.shape_cast %6 : vector<1x1x128xf32> to vector<1x128xf32>
    %8 = vector.shape_cast %5 : vector<1x128xf32> to vector<1x1x128xf32>
    tpu.vector_store %arg4[%c0_6, %c0_7, %c0_8], %8 {strides = array<i32>} : memref<1x1x128xf32, #tpu.memory_space<vmem>>, vector<1x1x128xf32>,
    %9 = arith.mulf %2, %2 : vector<128x128xf32>
    %cst_9 = arith.constant dense<0.000000e+00> : vector<128xf32>
    %10 = vector.multi_reduction <add>, %9, %cst_9 [0] : vector<128x128xf32> to vector<128xf32>
    %11 = vector.shape_cast %10 : vector<128xf32> to vector<1x128xf32>
    %c0_10 = arith.constant 0 : index
    %c0_11 = arith.constant 0 : index
    %c0_12 = arith.constant 0 : index
    %12 = vector.load %arg5[%c0_10, %c0_11, %c0_12] : memref<1x1x128xf32, #tpu.memory_space<vmem>>, vector<1x1x128xf32>
    %13 = vector.shape_cast %12 : vector<1x1x128xf32> to vector<1x128xf32>
    %14 = vector.shape_cast %11 : vector<1x128xf32> to vector<1x1x128xf32>
    tpu.vector_store %arg5[%c0_10, %c0_11, %c0_12], %14 {strides = array<i32>} : memref<1x1x128xf32, #tpu.memory_space<vmem>>, vector<1x1x128xf32>,
    return
  }
  func.func @transform_0(%arg0: i32) -> (i32, i32) {
    %c0_i32 = arith.constant 0 : i32
    %c0_i32_0 = arith.constant 0 : i32
    return %arg0, %c0_i32 : i32, i32
  }
  func.func @transform_1(%arg0: i32) -> (i32, i32) {
    %c0_i32 = arith.constant 0 : i32
    %c0_i32_0 = arith.constant 0 : i32
    %c0_i32_1 = arith.constant 0 : i32
    return %c0_i32, %c0_i32_0 : i32, i32
  }
  func.func @transform_2(%arg0: i32) -> (i32, i32) {
    %c0_i32 = arith.constant 0 : i32
    %c0_i32_0 = arith.constant 0 : i32
    return %arg0, %c0_i32 : i32, i32
  }
  func.func @transform_3(%arg0: i32) -> (i32, i32, i32) {
    %c0_i32 = arith.constant 0 : i32
    %c0_i32_0 = arith.constant 0 : i32
    %c0_i32_1 = arith.constant 0 : i32
    return %arg0, %c0_i32, %c0_i32_0 : i32, i32, i32
  }
  func.func @transform_4(%arg0: i32) -> (i32, i32, i32) {
    %c0_i32 = arith.constant 0 : i32
    %c0_i32_0 = arith.constant 0 : i32
    %c0_i32_1 = arith.constant 0 : i32
    return %arg0, %c0_i32, %c0_i32_0 : i32, i32, i32
  }
}

</mosaic_0001>

<bundles_post_ra>
// kernel: tpu_custom_call.1
= control target key start
LH: loop header
LB: loop body
LE: loop exit
PB: predicated region body
PF: predicated region fallthrough
CT: control target
= control target key end

     0   :  { %10 = vsyncpa [#allocation3], 0  ;;  %s1202_s0 = inlined_call_operand.vmem [shape: bf16[512,40], index: 0, kind: input, shape index: {}]   ;;  %s1203_s1 = inlined_call_operand.vmem [shape: bf16[40,128], index: 1, kind: input, shape index: {}]   ;;  %s1204_s2 = inlined_call_operand.hbm [shape: f32[512,128], index: 2, kind: output, shape index: {0}]   ;;  %s1205_s3 = inlined_call_operand.hbm [shape: f32[4,1,128], index: 3, kind: output, shape index: {1}]   ;;  %s1206_s4 = inlined_call_operand.hbm [shape: f32[4,1,128], index: 4, kind: output, shape index: {2}]  }
   0x1   :  { %12 = vsyncpa [#allocation3 + $0x1], 0 }
   0x2   :  { %13 = vsyncpa [#allocation5], 0 }
   0x3   :  { %15 = vsyncpa [#allocation5 + $0x1], 0  ;;  %s948_s15 = smov 0   ;;  %s950_s16 = smov 0  }
   0x4   :  { %s952_s17 = smov 0   ;;  %s954_s18 = smov 0  }
   0x5 LB: > { %s969_s19 = sadd.s32 4294967295, %s916_s18   ;;  %s657_s20 = sadd.s32 4294967294, %s916_s18   ;;  %s916_s18 = sphi %s954_s18, %s1212_s18   ;;  %s912_s17 = sphi %s952_s17, %s1211_s17   ;;  %s908_s16 = sphi %s950_s16, %s1210_s16   ;;  %s904_s15 = sphi %s948_s15, %s1209_s15  }
   0x6   : > { %s973_s21 = sadd.s32 1, %s916_s18   ;;  %s75_s22 = sadd.s32 1, %s912_s17 }
   0x7   : > { %s72_s23 = ssub.s32 %s916_s18, %s973_s21  ;;  %p85_p0 = scmp.ne.s32.totalorder %s912_s17, %s908_s16 }
   0x8   : > { %p73_p1 = scmp.eq.s32.totalorder %s72_s23, 0  ;;  %p86_p2 = scmp.eq.s32.totalorder %s969_s19, 3 }
   0x9   : > { %p91_p3 = scmp.ne.s32.totalorder %s908_s16, %s904_s15  ;;  %p92_p4 = scmp.eq.s32.totalorder %s657_s20, 3 }
   0xa   : > { %s986_s24 = scalar_select %p73_p1, %s912_s17, %s75_s22  }
   0xb   : > { %p988_p5 = por %p86_p2, %p85_p0  ;;  %p992_p6 = por %p92_p4, %p91_p3 }
   0xc   : > { %p660_p7 = scmp.ge.s32.totalorder %s916_s18, 1  ;;  %p174_p8 = scmp.lt.s32.totalorder %s916_s18, 5 }
   0xe   : > { %p175_p9 = pnand %p660_p7, %p174_p8 }
   0xf   : > { %v783_v0 = vld [vmem:[%s1203_s1] sm:$0xff] (!%p175_p9)   ;;  %v784_v1 = vld [vmem:[%s1203_s1 + $0x8] sm:$0xff] (!%p175_p9)   ;;  %s1005_s5 = sshll.u32 (!%p175_p9), %s969_s19, 4  ;;  %v785_v2 = vld [vmem:[%s1203_s1 + $0x10] ss:$0 sps:$4 sm:$0xff] (!%p175_p9)   ;;  %vm317_vm0 = vcmask (!%p175_p9), 1043456  }
  0x10   : > { %178 = sbr.rel (%p175_p9) target bundleno = 333 (0x14d), region = 28  ;;  %702 = vmatprep.subr.bf16.mxu0 (!%p175_p9), %v783_v0  ;;  %p209_p10 = scmp.lt.s32.totalorder (!%p175_p9), %s1005_s5, 63  ;;  %724 = vmatprep.subr.bf16.mxu1 (!%p175_p9), %v783_v0  ;;  %vm292_vm1 = vcmask (!%p175_p9), 326656   ;;  %v319_v3 = vsel (!%p175_p9), %vm317_vm0, %v785_v2, 0 }
  0x11   : > { %703 = vmatpush3.bf16.msra.mxu0 (!%p175_p9), %v783_v0  ;;  %727 = vmatpush3.bf16.msra.mxu1 (!%p175_p9), %v783_v0  ;;  %s1024_s13 = sand.u32 (!%p175_p9), 1, %s908_s16   ;;  %s690_s23 = sshll.u32 (!%p175_p9), %s969_s19, 11 }
  0x12   : > { %704 = vmatprep.subr.bf16.mxu0 (!%p175_p9), %v784_v1  ;;  %725 = vmatprep.subr.bf16.mxu1 (!%p175_p9), %v784_v1  ;;  %s661_s14 = sshll.u32 (!%p175_p9), %s1024_s13, 7  ;;  %s1060_s30 = scalar_lea.hbm (!%p175_p9), %s1204_s2, %s690_s23 }
  0x13   : > { %s1027_s22 = scalar_lea.vmem (!%p175_p9), [#allocation2], %s661_s14  ;;  %s495_s6 = scalar_lea.sflag (!%p175_p9), [#allocation3], %s1024_s13 }
  0x14   : > { %s516_s27 = sshll.u32 (!%p175_p9), %s1027_s22, 4  ;;  %s1062_s27 = int_to_ptr.vmem [resolvable:$true] %s516_s27 }
  0x15   : > { %705 = vmatpush3.bf16.msra.mxu0 (!%p175_p9), %v784_v1  ;;  %728 = vmatpush3.bf16.msra.mxu1 (!%p175_p9), %v784_v1  ;;  %s794_s7 = scalar_lea.vmem (!%p175_p9), %s1062_s27, 2048 }
  0x16   : > { %730 = vmatprep.subr.msk.bf16.mxu0 (!%p175_p9), %vm317_vm0, %v785_v2  ;;  %731 = vmatprep.subr.msk.bf16.mxu1 (!%p175_p9), %vm317_vm0, %v785_v2  ;;  %p795_p11 = scmp.ne.s32.totalorder (!%p175_p9), %s1062_s27, %s794_s7 }
  0x17   : > { %s210_s8 = scalar_select %p209_p10, %s1005_s5, 63 }
  0x18   : > { %p796_p12 = pnand %p795_p11, %p988_p5 }
  0x19   : > { %s663_s9 = sshll.u32 %s210_s8, 2  ;;  %707 = vmatpush3.bf16.msra.mxu0 %v319_v3  ;;  %729 = vmatpush3.bf16.msra.mxu1 %v319_v3  ;;  %s918_s8 = smov [#allocation2]  }
  0x1a   : > { %s212_s12 = scalar_lea.vmem %s1202_s0, %s663_s9  ;;  %p797_p13 = pneg %p796_p12 }
  0x1b   : > { %v786_v4 = vld [vmem:[%s212_s12] sm:$0xff]   ;;  %v787_v5 = vld [vmem:[%s212_s12 + $0x8] sm:$0xff]   ;;  %v788_v6 = vld [vmem:[%s212_s12 + $0x10] sm:$0xff]   ;;  %s798_s9 = sshll.u32 %s918_s8, 4  ;;  %s799_s9 = int_to_ptr.vmem [resolvable:$false] %s798_s9 }
  0x1c   : > { %708 = vmatprep.mubr.msk.bf16.mxu0 %vm292_vm1, %v786_v4  ;;  %v790_v7 = vld [vmem:[%s212_s12 + $0x20] sm:$0xff]   ;;  %v791_v8 = vld [vmem:[%s212_s12 + $0x28] sm:$0xff]   ;;  %v792_v9 = vld [vmem:[%s212_s12 + $0x30] sm:$0xff]   ;;  %s800_s10 = scalar_lea.vmem %s799_s9, 4096  ;;  %p801_p0 = scmp.lt.s32.totalorder %s1062_s27, %s799_s9 }
  0x1d   : > { %709 = vmatmul.mubr.msk.bf16.vlgmr.msra.gmra.mrb[0].mxu0 %vm292_vm1, %v787_v5  ;;  %716 = vmatprep.mubr.msk.bf16.mxu1 %vm292_vm1, %v790_v7  ;;  %v789_v10 = vld [vmem:[%s212_s12 + $0x18] sm:$0xff]   ;;  %p802_p1 = scmp.lt.s32.totalorder %s800_s10, %s794_s7 }
  0x1e   : > { %712 = vmatprep.mubr.msk.bf16.mxu0 %vm292_vm1, %v788_v6  ;;  %717 = vmatmul.mubr.msk.bf16.vlgmr.msra.gmra.mrb[0].mxu1 %vm292_vm1, %v791_v8  ;;  %v793_v11 = vld [vmem:[%s212_s12 + $0x38] sm:$0xff]  }
  0x1f   : > { %720 = vmatprep.mubr.msk.bf16.mxu1 %vm292_vm1, %v792_v9  ;;  %p803_p2 = por %p802_p1, %p801_p0 }
  0x21   : > { %p804_p3 = pnand %p803_p2, %p797_p13 }
  0x25   : > { %713 = vmatmul.mubr.msk.bf16.gmra.mrb[4].mxu0 %vm292_vm1, %v789_v10 }
  0x26   : > { %721 = vmatmul.mubr.msk.bf16.gmra.mrb[4].mxu1 %vm292_vm1, %v793_v11 }
  0xf0   : > { %v710_v12 = vpop.f32.mrb[0].mxu0 }
  0xf1   : > { %420 = vst [vmem:[%s1027_s22 + $0x10] sm:$0xff] %v710_v12  ;;  %v355_v13 = vpop.f32.mrb[1].mxu0  ;;  %v1030_v14 = vpop.f32.mrb[0].mxu1  ;;  %v458_v23 = vmul.f32 %v710_v12, %v710_v12 }
  0xf2   : > { %418 = vst [vmem:[%s1027_s22] sm:$0xff] %v355_v13  ;;  %v711_v15 = vpop.f32.mrb[2].mxu0  ;;  %428 = vst [vmem:[%s1027_s22 + $0x50] sm:$0xff] %v1030_v14  ;;  %v1035_v16 = vpop.f32.mrb[1].mxu1  ;;  %v456_v19 = vmul.f32 %v355_v13, %v355_v13 }
  0xf3   : > { %421 = vst [vmem:[%s1027_s22 + $0x18] sm:$0xff] %v711_v15  ;;  %v358_v17 = vpop.f32.mrb[3].mxu0  ;;  %426 = vst [vmem:[%s1027_s22 + $0x40] sm:$0xff] %v1035_v16  ;;  %v1040_v18 = vpop.f32.mrb[2].mxu1  ;;  %v459_v26 = vmul.f32 %v711_v15, %v711_v15 }
  0xf4   : > { %419 = vst [vmem:[%s1027_s22 + $0x8] sm:$0xff] %v358_v17  ;;  %v434_v20 = vadd.f32 %v358_v17, %v355_v13  ;;  %v457_v21 = vmul.f32 %v358_v17, %v358_v17  ;;  %429 = vst [vmem:[%s1027_s22 + $0x58] sm:$0xff] %v1040_v18  ;;  %v1045_v22 = vpop.f32.mrb[3].mxu1 }
  0xf5   : > { %427 = vst [vmem:[%s1027_s22 + $0x48] sm:$0xff] %v1045_v22 }
  0xf6   : > { %v435_v24 = vadd.f32 %v710_v12, %v434_v20  ;;  %v472_v25 = vadd.f32 %v457_v21, %v456_v19 }
  0xf8   : > { %v473_v27 = vadd.f32 %v472_v25, %v458_v23  ;;  %v714_v28 = vpop.f32.mrb[4].mxu0  ;;  %v436_v29 = vadd.f32 %v711_v15, %v435_v24 }
  0xf9   : > { %424 = vst [vmem:[%s1027_s22 + $0x30] sm:$0xff] %v714_v28  ;;  %v371_v30 = vpop.f32.mrb[5].mxu0  ;;  %v1052_v31 = vpop.f32.mrb[4].mxu1  ;;  %v462_v43 = vmul.f32 %v714_v28, %v714_v28 }
  0xfa   : > { %422 = vst [vmem:[%s1027_s22 + $0x20] sm:$0xff] %v371_v30  ;;  %v437_v32 = vadd.f32 %v436_v29, %v371_v30  ;;  %v460_v33 = vmul.f32 %v371_v30, %v371_v30  ;;  %v474_v34 = vadd.f32 %v473_v27, %v459_v26  ;;  %v715_v35 = vpop.f32.mrb[6].mxu0  ;;  %432 = vst [vmem:[%s1027_s22 + $0x70] sm:$0xff] %v1052_v31  ;;  %v403_v36 = vpop.f32.mrb[5].mxu1 }
  0xfb   : > { %425 = vst [vmem:[%s1027_s22 + $0x38] sm:$0xff] %v715_v35  ;;  %v374_v37 = vpop.f32.mrb[7].mxu0  ;;  %430 = vst [vmem:[%s1027_s22 + $0x60] sm:$0xff] %v403_v36  ;;  %v1066_v38 = vpop.f32.mrb[6].mxu1 }
  0xfc   : > { %v475_v39 = vadd.f32 %v474_v34, %v460_v33  ;;  %423 = vst [vmem:[%s1027_s22 + $0x28] sm:$0xff] %v374_v37  ;;  %v438_v40 = vadd.f32 %v437_v32, %v374_v37  ;;  %v461_v41 = vmul.f32 %v374_v37, %v374_v37  ;;  %433 = vst [vmem:[%s1027_s22 + $0x78] sm:$0xff] %v1066_v38  ;;  %v406_v42 = vpop.f32.mrb[7].mxu1 }
  0xfd   : > { %431 = vst [vmem:[%s1027_s22 + $0x68] sm:$0xff] %v406_v42 }
  0xfe   : > { %v439_v44 = vadd.f32 %v714_v28, %v438_v40  ;;  %v476_v45 = vadd.f32 %v475_v39, %v461_v41 }
  0xff   : > { %807 = shalt.err (!%p804_p3)
}
 0x100   : > { %s808_s11 = scalar_lea.hbm %s1060_s30, 2048  ;;  %s812_s22 = scalar_lea.hbm %s1204_s2, 8192 }
 0x101   : > { %p809_p4 = scmp.ne.s32.totalorder %s1060_s30, %s808_s11  ;;  %p813_p9 = scmp.lt.u32.totalorder %s1060_s30, %s1204_s2 }
 0x102   : > { %p814_p10 = scmp.lt.u32.totalorder %s812_s22, %s808_s11  ;;  %p816_p12 = scmp.lt.u32.totalorder %s808_s11, %s1060_s30 }
 0x103   : > { %p810_p7 = pnand %p809_p4, %p988_p5 }
 0x104   : > { %p815_p11 = por %p814_p10, %p813_p9 }
 0x105   : > { %p811_p8 = pneg %p810_p7 }
 0x106   : > { %p817_p13 = por %p816_p12, %p815_p11 }
 0x108   : > { %p818_p0 = pnand %p817_p13, %p811_p8 }
 0x10a   : > { %821 = shalt.err (!%p818_p0)
}
 0x10b   : > { %s919_s29 = smov 128   ;;  %s920_s7 = smov 8   ;;  %v463_v46 = vmul.f32 %v715_v35, %v715_v35  ;;  %v477_v47 = vadd.f32 %v476_v45, %v462_v43  ;;  %v440_v48 = vadd.f32 %v715_v35, %v439_v44  ;;  %v464_v49 = vmul.f32 %v1035_v16, %v1035_v16 }
 0x10c   : > { %732 = dma.vmem_to_hbm [thread:$0]  (%p988_p5), %s1062_s27, 2048, %s1060_s30, %s495_s6, %s919_s29, %s919_s29, %s920_s7   ;;  %v465_v54 = vmul.f32 %v1045_v22, %v1045_v22  ;;  %v466_v55 = vmul.f32 %v1030_v14, %v1030_v14  ;;  %v467_v58 = vmul.f32 %v1040_v18, %v1040_v18  ;;  %v468_v61 = vmul.f32 %v403_v36, %v403_v36 }
 0x10d   : > { %v441_v50 = vadd.f32 %v440_v48, %v1035_v16  ;;  %v478_v51 = vadd.f32 %v477_v47, %v463_v46  ;;  %v469_v2 = vmul.f32 %v406_v42, %v406_v42  ;;  %v470_v3 = vmul.f32 %v1052_v31, %v1052_v31  ;;  %s499_s27 = sand.u32 1, %s969_s19   ;;  %s201_s30 = scalar_lea.vmem [#allocation4], %s1024_s13 }
 0x10e   : > { %v471_v6 = vmul.f32 %v1066_v38, %v1066_v38  ;;  %s532_s6 = sshll.u32 %s201_s30, 4  ;;  %s1120_s10 = scalar_lea.hbm %s1205_s3, %s1005_s5  ;;  %s1125_s6 = int_to_ptr.vmem [resolvable:$true] %s532_s6 }
 0x10f   : > { %v479_v52 = vadd.f32 %v478_v51, %v464_v49  ;;  %v442_v53 = vadd.f32 %v441_v50, %v1045_v22  ;;  %s207_s11 = scalar_lea.vmem [#allocation6], %s1024_s13  ;;  %s1131_s22 = scalar_lea.hbm %s1206_s4, %s1005_s5 }
 0x110   : > { %s545_s12 = sshll.u32 %s207_s11, 4  ;;  %s1135_s23 = scalar_lea.sflag [#allocation5], %s499_s27  ;;  %s1133_s12 = int_to_ptr.vmem [resolvable:$true] %s545_s12 }
 0x111   : > { %v443_v56 = vadd.f32 %v1030_v14, %v442_v53  ;;  %v480_v57 = vadd.f32 %v479_v52, %v465_v54  ;;  %s822_s28 = scalar_lea.vmem %s1125_s6, 16  ;;  %s921_s29 = smov [#allocation4]  }
 0x112   : > { %p823_p1 = scmp.ne.s32.totalorder %s1125_s6, %s822_s28  ;;  %s826_s7 = sshll.u32 %s921_s29, 4  ;;  %s827_s7 = int_to_ptr.vmem [resolvable:$false] %s826_s7 }
 0x113   : > { %v481_v59 = vadd.f32 %v480_v57, %v466_v55  ;;  %v444_v60 = vadd.f32 %v1040_v18, %v443_v56  ;;  %s828_s8 = scalar_lea.vmem %s827_s7, 32  ;;  %p829_p4 = scmp.lt.s32.totalorder %s1125_s6, %s827_s7 }
 0x114   : > { %p824_p2 = pnand %p823_p1, %p988_p5  ;;  %p830_p7 = scmp.lt.s32.totalorder %s828_s8, %s822_s28 }
 0x115   : > { %v445_v62 = vadd.f32 %v444_v60, %v403_v36  ;;  %v482_v63 = vadd.f32 %v481_v59, %v467_v58 }
 0x116   : > { %p825_p3 = pneg %p824_p2  ;;  %p831_p8 = por %p830_p7, %p829_p4 }
 0x117   : > { %v483_v0 = vadd.f32 %v482_v63, %v468_v61  ;;  %v446_v1 = vadd.f32 %v445_v62, %v406_v42 }
 0x118   : > { %p832_p9 = pnand %p831_p8, %p825_p3 }
 0x119   : > { %v447_v4 = vadd.f32 %v1052_v31, %v446_v1  ;;  %v484_v5 = vadd.f32 %v483_v0, %v469_v2 }
 0x11b   : > { %v448_v7 = vadd.f32 %v1066_v38, %v447_v4  ;;  %v485_v8 = vadd.f32 %v484_v5, %v470_v3 }
 0x11d   : > { %v449_v9 = vrot.slane %v448_v7, 4  ;;  %v486_v10 = vadd.f32 %v485_v8, %v471_v6 }
 0x11f   : > { %v450_v11 = vadd.f32 %v449_v9, %v448_v7  ;;  %v487_v12 = vrot.slane %v486_v10, 4 }
 0x121   : > { %v488_v13 = vadd.f32 %v487_v12, %v486_v10  ;;  %v451_v14 = vrot.slane %v450_v11, 2 }
 0x123   : > { %v452_v15 = vadd.f32 %v451_v14, %v450_v11  ;;  %v489_v16 = vrot.slane %v488_v13, 2 }
 0x125   : > { %v453_v17 = vrot.slane %v452_v15, 1  ;;  %v490_v18 = vadd.f32 %v489_v16, %v488_v13 }
 0x127   : > { %v454_v19 = vadd.f32 %v453_v17, %v452_v15  ;;  %v491_v20 = vrot.slane %v490_v18, 1 }
 0x129   : > { %455 = vst [vmem:[%s201_s30] sm:$0x1] %v454_v19  ;;  %v492_v21 = vadd.f32 %v491_v20, %v490_v18 }
 0x12a   : > { %835 = shalt.err (!%p832_p9)
}
 0x12b   : > { %s836_s5 = scalar_lea.hbm %s1120_s10, 16  ;;  %s840_s9 = scalar_lea.hbm %s1205_s3, 64 }
 0x12c   : > { %p837_p10 = scmp.ne.s32.totalorder %s1120_s10, %s836_s5  ;;  %p841_p13 = scmp.lt.u32.totalorder %s1120_s10, %s1205_s3 }
 0x12d   : > { %p842_p0 = scmp.lt.u32.totalorder %s840_s9, %s836_s5  ;;  %p844_p2 = scmp.lt.u32.totalorder %s836_s5, %s1120_s10 }
 0x12e   : > { %p838_p11 = pnand %p837_p10, %p988_p5 }
 0x12f   : > { %p843_p1 = por %p842_p0, %p841_p13 }
 0x130   : > { %p839_p12 = pneg %p838_p11 }
 0x131   : > { %p845_p3 = por %p844_p2, %p843_p1 }
 0x133   : > { %p846_p4 = pnand %p845_p3, %p839_p12 }
 0x135   : > { %849 = shalt.err (!%p846_p4)
}
 0x136   : > { %733 = dma.vmem_to_hbm [thread:$0]  (%p988_p5), %s1125_s6, 16, %s1120_s10, %s1135_s23   ;;  %493 = vst [vmem:[%s207_s11] sm:$0x1] %v492_v21 }
 0x137   : > { %s850_s28 = scalar_lea.vmem %s1133_s12, 16  ;;  %s922_s29 = smov [#allocation6]  }
 0x138   : > { %p851_p7 = scmp.ne.s32.totalorder %s1133_s12, %s850_s28  ;;  %s854_s7 = sshll.u32 %s922_s29, 4  ;;  %s855_s7 = int_to_ptr.vmem [resolvable:$false] %s854_s7 }
 0x139   : > { %s856_s8 = scalar_lea.vmem %s855_s7, 32  ;;  %p857_p10 = scmp.lt.s32.totalorder %s1133_s12, %s855_s7 }
 0x13a   : > { %p852_p8 = pnand %p851_p7, %p988_p5  ;;  %p858_p11 = scmp.lt.s32.totalorder %s856_s8, %s850_s28 }
 0x13c   : > { %p853_p9 = pneg %p852_p8  ;;  %p859_p12 = por %p858_p11, %p857_p10 }
 0x13e   : > { %p860_p13 = pnand %p859_p12, %p853_p9 }
 0x140   : > { %863 = shalt.err (!%p860_p13)
}
 0x141   : > { %s864_s13 = scalar_lea.hbm %s1131_s22, 16  ;;  %s868_s11 = scalar_lea.hbm %s1206_s4, 64 }
 0x142   : > { %p865_p0 = scmp.ne.s32.totalorder %s1131_s22, %s864_s13  ;;  %p869_p3 = scmp.lt.u32.totalorder %s1131_s22, %s1206_s4 }
 0x143   : > { %p870_p4 = scmp.lt.u32.totalorder %s868_s11, %s864_s13  ;;  %p872_p8 = scmp.lt.u32.totalorder %s864_s13, %s1131_s22 }
 0x144   : > { %p866_p1 = pnand %p865_p0, %p988_p5 }
 0x145   : > { %p871_p7 = por %p870_p4, %p869_p3 }
 0x146   : > { %p867_p2 = pneg %p866_p1 }
 0x147   : > { %p873_p9 = por %p872_p8, %p871_p7 }
 0x149   : > { %p874_p10 = pnand %p873_p9, %p867_p2 }
 0x14b   : > { %877 = shalt.err (!%p874_p10)
}
 0x14c   : > { %734 = dma.vmem_to_hbm [thread:$0]  (%p988_p5), %s1133_s12, 16, %s1131_s22, %s1135_s23  }
 0x14d PF: > { %p748_p11 = scmp.ge.s32.totalorder %s916_s18, 2  ;;  %s557_s30 = sand.u32 1, %s904_s15  }
 0x14e   : > { %s558_s9 = scalar_lea.sflag [#allocation3], %s557_s30 }
 0x14f   : > { %p739_p12 = pnand %p748_p11, %p992_p6 }
 0x151   : > { %895 = dma.done.wait (!%p739_p12), %s558_s9, 2048  }
 0x152   : > { %897 = vsyncadd (!%p739_p12), %s558_s9, 4294965248  ;;  %s566_s19 = sand.u32 1, %s657_s20  }
 0x153   : > { %s567_s14 = scalar_lea.sflag [#allocation5], %s566_s19 }
 0x154   : > { %899 = dma.done.wait (!%p739_p12), %s567_s14, 32  }
 0x155   : > { %901 = vsyncadd (!%p739_p12), %s567_s14, 4294967264  ;;  %p18_p5 = scmp.ge.s32.totalorder %s973_s21, 6   ;;  %s1209_s15 = smov %s908_s16 }
 0x156   : > { %s1210_s16 = smov %s912_s17  ;;  %s1211_s17 = smov %s986_s24 }
 0x157   : > { %s1212_s18 = smov %s973_s21  ;;  %20 = sbr.rel (!%p18_p5) target bundleno = 5 (0x5), region = 95 }
 0x15e   :  { %579 = vsyncpa [#allocation3], 1 }
 0x15f   :  { %581 = vsyncpa [#allocation3 + $0x1], 1 }
 0x160   :  { %582 = vsyncpa [#allocation5], 1 }
 0x161   :  { %584 = vsyncpa [#allocation5 + $0x1], 1 }

</bundles_post_ra>
